<compile_context>
chip_gen: v7x
topology: tpu7x:2x2x1
jax: 0.10.0
libtpu: 0.0.40
codegen_flags: <defaults>
</compile_context>

<pallas_src>
import jax
import jax.numpy as jnp
from jax import lax
from jax.experimental import pallas as pl
from jax.experimental.pallas import tpu as pltpu

_MIB = 1024 * 1024


def _round_up(x: int, m: int) -> int:
    return ((x + m - 1) // m) * m


def _round_down(x: int, m: int) -> int:
    return (x // m) * m


def _vmem_capacity_bytes() -> int:
    """Physical VMEM of the local TPU generation (fallback via device_kind)."""
    try:
        cap = int(pltpu.get_tpu_info().vmem_capacity_bytes)
        if cap >= 16 * _MIB:
            return cap
    except Exception:
        pass
    try:
        kind = jax.devices()[0].device_kind.lower()
    except Exception:
        kind = ""
    return (64 if "v7" in kind else 128) * _MIB


def _shrink_granularity() -> int:
    """Keep MXU M-tiles full when shrinking TQ: 128 on v5e, 256 on v6e/v7x."""
    try:
        kind = jax.devices()[0].device_kind.lower()
    except Exception:
        kind = ""
    return 128 if "v5" in kind else 256


def _pick_tiles(q, c, d, itemsize, budget, gran):
    """Pick (tq, tc, c_pad, resident_protos) that fit the VMEM budget."""
    c_pad = _round_up(c, 128)                      # lane-dense (TQ, C) tiles
    proto_budget = budget // 3
    proto_bytes_resident = c_pad * (d * itemsize + 4)        # single-buffered
    if proto_bytes_resident <= proto_budget:
        tc, resident = c_pad, True
        proto_bytes = proto_bytes_resident
    else:
        resident = False
        per_col = 2 * (d * itemsize + 4)                     # streamed -> 2 buffers
        tc = max(128, _round_down(proto_budget // per_col, 128))
        if tc >= 256:
            tc = _round_down(tc, 256)
        tc = min(tc, c_pad)
        c_pad = _round_up(c, tc)                             # tc must divide c_pad
        proto_bytes = 2 * tc * (d * itemsize + 4)

    remaining = max(budget - proto_bytes, _MIB)
    # 2x double-buffered (TQ,D)+(TQ,1) input tiles + ~8 f32 (TQ,TC) temporaries.
    per_row = 2 * (d * itemsize + 4) + 8 * tc * 4
    tq_max = max(8, remaining // per_row)
    tq_cap = min(512, _round_up(q, 8))
    tq = min(tq_cap, tq_max)
    if tq < tq_cap:                                # shrunk by the VMEM budget
        g = gran if tq >= gran else 8
        tq = max(8, _round_down(tq, g))
    return int(tq), int(tc), int(c_pad), resident


def _make_kernel(tao, b, beta, *, q, tq, need_row_mask, mxu_bf16):
    inv_beta = 1.0 / beta
    affine = b - tao                 # z = d2 + affine
    thresh = 10.0 - affine           # (z < 10)  <=>  (d2 < thresh)
    beta_affine = beta * affine      # beta*z = beta*d2 + beta_affine

    def kernel(f_ref, f2_ref, p_ref, p2_ref, o_ref):
        f = f_ref[...]                                       # (TQ, D) native dtype
        p = p_ref[...]                                       # (TC, D)
        if mxu_bf16 and f.dtype == jnp.float32:
            # Opt-in bf16 MXU feed (see wrapper docstring precision note).
            f = f.astype(jnp.bfloat16)
            p = p.astype(jnp.bfloat16)
        cross = lax.dot_general(
            f, p, dimension_numbers=(((1,), (1,)), ((), ())),
            preferred_element_type=jnp.float32)              # (TQ, TC) f32, MXU

        d2 = f2_ref[...] + p2_ref[...] - 2.0 * cross         # ||f-p||^2 via hoisted norms
        d2 = jnp.maximum(d2, 0.0)                            # guard cancellation

        # likes == all-ones in the reference, so labels never affect the loss.
        bz = beta * d2 + beta_affine
        # NOTE: jnp.where evaluates both branches; exp overflow in the masked
        # branch stays finite after selection.
        # TODO(synk): optional bf16 softplus on v6e/v7x (bf16 EUP) for ~2x EUP
        # throughput at small D; kept f32 for parity with the f32 reference.
        g = jnp.where(d2 < thresh,
                      jnp.log1p(jnp.exp(bz)) * inv_beta,
                      d2 + affine)

        if need_row_mask:
            # Only padded Q rows need masking: rank-(TQ,1) compare, lane-broadcast.
            rows = pl.program_id(0) * tq + lax.broadcasted_iota(jnp.int32, (tq, 1), 0)
            g = jnp.where(rows < q, g, 0.0)

        # Sublane-only reduce (XLU); final lane reduce + 1/(Q*C) live in the wrapper.
        o_ref[0] = jnp.sum(g, axis=0, keepdims=True)         # (1, TC)

    return kernel


def pairwise_loss(features, labels, prototypes, *, tao=1.0, b=1.0, beta=0.1,
                  mxu_bf16=False):
    """features: (Q, D); labels: (Q,) int (unused by the reference forward math);
    prototypes: (C, D).  Returns the scalar f32 loss.

    mxu_bf16=True feeds the MXU cross term in bf16 even for f32 inputs (much
    faster for large D), but the squared-distance cancellation then happens at
    bf16 precision -- leave False for bit-faithful-ish parity with torch.cdist.
    """
    del labels  # scatter of ones over ones in the reference -> no-op on the loss

    q, d = features.shape
    c, d_p = prototypes.shape
    assert d == d_p, "feature dims must match"

    itemsize = int(jnp.dtype(features.dtype).itemsize)
    vmem_cap = _vmem_capacity_bytes()
    budget = (3 * vmem_cap) // 4          # ~48 MiB on v7x, ~96 MiB on v5e/v6e
    tq, tc, c_pad, resident = _pick_tiles(q, c, d, itemsize, budget,
                                          _shrink_granularity())
    q_pad = _round_up(q, tq)
    num_q_blocks = q_pad // tq
    num_c_blocks = c_pad // tc

    f = features
    if q_pad != q:
        f = jnp.pad(f, ((0, q_pad - q), (0, 0)))
    p = prototypes
    if c_pad != c:
        p = jnp.pad(p, ((0, c_pad - c), (0, 0)))

    # Squared norms hoisted out of the kernel (f32).
    f32 = f.astype(jnp.float32)
    f2 = jnp.sum(f32 * f32, axis=-1, keepdims=True)                  # (q_pad, 1)
    p32 = p.astype(jnp.float32)
    p2 = jnp.sum(p32 * p32, axis=-1, keepdims=True).reshape(1, c_pad)  # (1, c_pad)

    kernel = _make_kernel(float(tao), float(b), float(beta),
                          q=q, tq=tq, need_row_mask=(q_pad != q),
                          mxu_bf16=bool(mxu_bf16))

    # Resident prototypes never change -> single-buffered; streamed -> default 2.
    proto_pm = dict(pipeline_mode=pl.Buffered(1)) if resident else {}
    in_specs = [
        pl.BlockSpec((tq, d), lambda i, j: (i, 0)),               # features (Q-tiled)
        pl.BlockSpec((tq, 1), lambda i, j: (i, 0)),               # ||f||^2  (Q-tiled)
        pl.BlockSpec((tc, d), lambda i, j: (j, 0), **proto_pm),   # prototypes
        pl.BlockSpec((1, tc), lambda i, j: (0, j), **proto_pm),   # ||p||^2
    ]
    out_spec = pl.BlockSpec((1, 1, tc), lambda i, j: (i, 0, j))   # partial rows

    n_pbuf = 1 if resident else 2
    vmem_est = (2 * tq * (d * itemsize + 4)
                + n_pbuf * tc * (d * itemsize + 4)
                + 8 * tq * tc * 4
                + 2 * tc * 4)
    vmem_limit = int(max(32 * _MIB, min(vmem_est + 16 * _MIB, vmem_cap - 16 * _MIB)))

    proto_reads = 1 if resident else num_q_blocks
    cost = pl.CostEstimate(
        flops=int(2 * q_pad * c_pad * d + 8 * q_pad * c_pad),
        transcendentals=int(2 * q_pad * c_pad),
        bytes_accessed=int(itemsize * (q_pad * d + proto_reads * c_pad * d)
                           + 4 * (q_pad + c_pad + num_q_blocks * c_pad)),
    )

    partials = pl.pallas_call(
        kernel,
        out_shape=jax.ShapeDtypeStruct((num_q_blocks, 1, c_pad), jnp.float32),
        grid_spec=pltpu.PrefetchScalarGridSpec(
            num_scalar_prefetch=0,
            grid=(num_q_blocks, num_c_blocks),
            in_specs=in_specs,
            out_specs=out_spec,
        ),
        compiler_params=pltpu.CompilerParams(
            # No carried accumulator: Q axis is "parallel" (v7x megacore splits
            # it); C axis is "arbitrary" so streamed prototype blocks stay local.
            dimension_semantics=("parallel", "arbitrary"),
            vmem_limit_bytes=vmem_limit,
        ),
        cost_estimate=cost,
    )(f, f2, p, p2)

    # Padded C columns are dropped here (no in-kernel column mask needed);
    # single mean-scale at the end.
    return jnp.sum(partials[:, 0, :c]) * jnp.float32(1.0 / (q * c))


if __name__ == "__main__":
    key = jax.random.PRNGKey(0)
    kf, kp, kl = jax.random.split(key, 3)

    Q, C, D = 8, 4, 32  # q_num, cls_num, feature dim
    features = jax.random.normal(kf, (Q, D), dtype=jnp.float32)
    prototypes = jax.random.normal(kp, (C, D), dtype=jnp.float32)
    labels = jax.random.randint(kl, (Q,), 0, C, dtype=jnp.int32)

    loss = pairwise_loss(features, labels, prototypes, tao=1.0, b=1.0, beta=0.1)
    jax.block_until_ready(loss)

    # Pure-JAX reference of the same forward math (likes == all ones).
    d2_ref = jnp.sum((features[:, None, :] - prototypes[None, :, :]) ** 2, axis=-1)
    z_ref = 1.0 - 1.0 * (1.0 - d2_ref)
    g_ref = jnp.where(z_ref < 10.0, jnp.log1p(jnp.exp(0.1 * z_ref)) / 0.1, z_ref)
    ref = jnp.mean(g_ref)
    assert jnp.allclose(loss, ref, rtol=1e-5, atol=1e-5), (loss, ref)

    print("KERNEL_OK")
</pallas_src>

<mosaic_0001>
module attributes {stable_mosaic.version = 11 : i64} {
  func.func @kernel(%arg0: i32, %arg1: i32, %arg2: memref<8x32xf32, #tpu.memory_space<vmem>>, %arg3: memref<8x1xf32, #tpu.memory_space<vmem>>, %arg4: memref<128x32xf32, #tpu.memory_space<vmem>>, %arg5: memref<1x128xf32, #tpu.memory_space<vmem>>, %arg6: memref<1x1x128xf32, #tpu.memory_space<vmem>>) attributes {dimension_semantics = [#tpu.dimension_semantics<parallel>, #tpu.dimension_semantics<arbitrary>], iteration_bounds = array<i64: 1, 1>, scalar_prefetch = 0 : i64, scratch_operands = 0 : i64, tpu.core_type = #tpu.core_type<tc>, window_params = [{transform_indices = @transform_0, window_bounds = array<i64: 8, 32>}, {transform_indices = @transform_1, window_bounds = array<i64: 8, 1>}, {pipeline_mode = #tpu.pipeline_mode<synchronous>, transform_indices = @transform_2, window_bounds = array<i64: 128, 32>}, {pipeline_mode = #tpu.pipeline_mode<synchronous>, transform_indices = @transform_3, window_bounds = array<i64: 1, 128>}, {transform_indices = @transform_4, window_bounds = array<i64: 1, 1, 128>}]} {
    %c0 = arith.constant 0 : index
    %c0_0 = arith.constant 0 : index
    %0 = vector.load %arg2[%c0, %c0_0] : memref<8x32xf32, #tpu.memory_space<vmem>>, vector<8x32xf32>
    %c0_1 = arith.constant 0 : index
    %c0_2 = arith.constant 0 : index
    %1 = vector.load %arg4[%c0_1, %c0_2] : memref<128x32xf32, #tpu.memory_space<vmem>>, vector<128x32xf32>
    %cst = arith.constant dense<0.000000e+00> : vector<8x128xf32>
    %2 = tpu.matmul %0, %1, %cst {dimension_numbers = #tpu.dot_dimension_numbers<[1], [1], [0], [0], [0, 0, 1, 0], [], []>} : vector<8x32xf32>, vector<128x32xf32>, vector<8x128xf32> -> vector<8x128xf32>
    %c0_3 = arith.constant 0 : index
    %c0_4 = arith.constant 0 : index
    %3 = vector.load %arg3[%c0_3, %c0_4] : memref<8x1xf32, #tpu.memory_space<vmem>>, vector<8x1xf32>
    %c0_5 = arith.constant 0 : index
    %c0_6 = arith.constant 0 : index
    %4 = vector.load %arg5[%c0_5, %c0_6] : memref<1x128xf32, #tpu.memory_space<vmem>>, vector<1x128xf32>
    %5 = vector.broadcast %3 : vector<8x1xf32> to vector<8x128xf32>
    %6 = vector.broadcast %4 : vector<1x128xf32> to vector<8x128xf32>
    %7 = arith.addf %5, %6 : vector<8x128xf32>
    %cst_7 = arith.constant 2.000000e+00 : f32
    %8 = vector.broadcast %cst_7 : f32 to vector<8x128xf32>
    %9 = arith.mulf %8, %2 : vector<8x128xf32>
    %10 = arith.subf %7, %9 : vector<8x128xf32>
    %cst_8 = arith.constant 0.000000e+00 : f32
    %11 = vector.broadcast %cst_8 : f32 to vector<8x128xf32>
    %12 = arith.maximumf %10, %11 : vector<8x128xf32>
    %cst_9 = arith.constant 1.000000e-01 : f32
    %13 = vector.broadcast %cst_9 : f32 to vector<8x128xf32>
    %14 = arith.mulf %13, %12 : vector<8x128xf32>
    %cst_10 = arith.constant 0.000000e+00 : f32
    %15 = vector.broadcast %cst_10 : f32 to vector<8x128xf32>
    %16 = arith.addf %14, %15 : vector<8x128xf32>
    %cst_11 = arith.constant 1.000000e+01 : f32
    %17 = vector.broadcast %cst_11 : f32 to vector<8x128xf32>
    %18 = arith.cmpf olt, %12, %17 : vector<8x128xf32>
    %19 = math.exp %16 : vector<8x128xf32>
    %20 = math.log1p %19 : vector<8x128xf32>
    %cst_12 = arith.constant 1.000000e+01 : f32
    %21 = vector.broadcast %cst_12 : f32 to vector<8x128xf32>
    %22 = arith.mulf %20, %21 : vector<8x128xf32>
    %cst_13 = arith.constant 0.000000e+00 : f32
    %23 = vector.broadcast %cst_13 : f32 to vector<8x128xf32>
    %24 = arith.addf %12, %23 : vector<8x128xf32>
    %25 = arith.select %18, %22, %24 : vector<8x128xi1>, vector<8x128xf32>
    %cst_14 = arith.constant dense<0.000000e+00> : vector<128xf32>
    %26 = vector.multi_reduction <add>, %25, %cst_14 [0] : vector<8x128xf32> to vector<128xf32>
    %27 = vector.shape_cast %26 : vector<128xf32> to vector<1x128xf32>
    %c0_15 = arith.constant 0 : index
    %c0_16 = arith.constant 0 : index
    %c0_17 = arith.constant 0 : index
    %28 = vector.load %arg6[%c0_15, %c0_16, %c0_17] : memref<1x1x128xf32, #tpu.memory_space<vmem>>, vector<1x1x128xf32>
    %29 = vector.shape_cast %28 : vector<1x1x128xf32> to vector<1x128xf32>
    %30 = vector.shape_cast %27 : vector<1x128xf32> to vector<1x1x128xf32>
    tpu.vector_store %arg6[%c0_15, %c0_16, %c0_17], %30 {strides = array<i32>} : memref<1x1x128xf32, #tpu.memory_space<vmem>>, vector<1x1x128xf32>,
    return
  }
  func.func @transform_0(%arg0: i32, %arg1: i32) -> (i32, i32) {
    %c0_i32 = arith.constant 0 : i32
    %c0_i32_0 = arith.constant 0 : i32
    return %arg0, %c0_i32 : i32, i32
  }
  func.func @transform_1(%arg0: i32, %arg1: i32) -> (i32, i32) {
    %c0_i32 = arith.constant 0 : i32
    %c0_i32_0 = arith.constant 0 : i32
    return %arg0, %c0_i32 : i32, i32
  }
  func.func @transform_2(%arg0: i32, %arg1: i32) -> (i32, i32) {
    %c0_i32 = arith.constant 0 : i32
    %c0_i32_0 = arith.constant 0 : i32
    return %arg1, %c0_i32 : i32, i32
  }
  func.func @transform_3(%arg0: i32, %arg1: i32) -> (i32, i32) {
    %c0_i32 = arith.constant 0 : i32
    %c0_i32_0 = arith.constant 0 : i32
    return %c0_i32, %arg1 : i32, i32
  }
  func.func @transform_4(%arg0: i32, %arg1: i32) -> (i32, i32, i32) {
    %c0_i32 = arith.constant 0 : i32
    %c0_i32_0 = arith.constant 0 : i32
    return %arg0, %c0_i32, %arg1 : i32, i32, i32
  }
}

</mosaic_0001>

<bundles_post_ra>
// kernel: tpu_custom_call.1
= control target key start
LH: loop header
LB: loop body
LE: loop exit
PB: predicated region body
PF: predicated region fallthrough
CT: control target
= control target key end

     0   :  { %vm35_vm0 = vcmask 261120   ;;  %v348_v2 = vmov 0.0|0.0   ;;  %vm349_vm2 = vmmov 0   ;;  %v350_v5 = vmov 0.0   ;;  %s470_s0 = inlined_call_operand.vmem [shape: f32[8,32], index: 0, kind: input, shape index: {}]   ;;  %s471_s1 = inlined_call_operand.vmem [shape: f32[8,1], index: 1, kind: input, shape index: {}]   ;;  %s472_s2 = inlined_call_operand.vmem [shape: f32[128,32], index: 2, kind: input, shape index: {}]   ;;  %s473_s3 = inlined_call_operand.vmem [shape: f32[1,128], index: 3, kind: input, shape index: {}]   ;;  %s474_s4 = inlined_call_operand.hbm [shape: f32[1,1,128], index: 4, kind: output, shape index: {}]  }
   0x1   :  { %v19_v0 = vld [vmem:[%s472_s2] sm:$0xff]  ;;  %v20_v1 = vld [vmem:[%s472_s2 + $0x8] sm:$0xff]  ;;  %282 = vmatprep.subr.bf16.mxu0 %v348_v2  ;;  %vm386_vm1 = vmpackc.low %vm35_vm0, %vm35_vm0  ;;  %279 = vmatprep.mubr.msk.f32.mxu0 %vm349_vm2, %v350_v5  ;;  %v351_v6 = vmov 0  }
   0x2   :  { %v283_v3 = vpack.c.bf16 %v20_v1, %v19_v0  ;;  %319 = vset.pattern.permute.xlu0 %v351_v6  ;;  %v21_v7 = vld [vmem:[%s472_s2 + $0x10] sm:$0xff]  ;;  %v22_v8 = vld [vmem:[%s472_s2 + $0x18] sm:$0xff]  ;;  %v157_v9 = vld [vmem:[%s471_s1] sm:$0xff] }
   0x4   :  { %285 = vmatpush3.bf16.xpose.msk.msra.mxu0 %vm386_vm1, %v283_v3 }
   0x5   :  { %286 = vmatprep.subr.bf16.mxu0 %v348_v2 }
   0x6   :  { %9 = vsyncpa [#allocation3], 0  ;;  %v287_v10 = vpack.c.bf16 %v22_v8, %v21_v7  ;;  %161 = vperm.xlu0 %319, %v157_v9   ;;  %v23_v11 = vld [vmem:[%s472_s2 + $0x20] sm:$0xff]  ;;  %v24_v12 = vld [vmem:[%s472_s2 + $0x28] sm:$0xff] }
   0x7   :  { %v291_v13 = vpack.c.bf16 %v24_v12, %v23_v11  ;;  %v25_v14 = vld [vmem:[%s472_s2 + $0x30] sm:$0xff]  ;;  %v26_v15 = vld [vmem:[%s472_s2 + $0x38] sm:$0xff]  ;;  %v27_v17 = vld [vmem:[%s472_s2 + $0x40] sm:$0xff] }
   0x8   :  { %v295_v16 = vpack.c.bf16 %v26_v15, %v25_v14  ;;  %v28_v18 = vld [vmem:[%s472_s2 + $0x48] sm:$0xff]  ;;  %v29_v20 = vld [vmem:[%s472_s2 + $0x50] sm:$0xff]  ;;  %v30_v21 = vld [vmem:[%s472_s2 + $0x58] sm:$0xff] }
   0x9   :  { %v299_v19 = vpack.c.bf16 %v28_v18, %v27_v17  ;;  %v303_v22 = vpack.c.bf16 %v30_v21, %v29_v20  ;;  %v31_v23 = vld [vmem:[%s472_s2 + $0x60] sm:$0xff]  ;;  %v32_v24 = vld [vmem:[%s472_s2 + $0x68] sm:$0xff]  ;;  %v33_v26 = vld [vmem:[%s472_s2 + $0x70] sm:$0xff] }
   0xa   :  { %v307_v25 = vpack.c.bf16 %v32_v24, %v31_v23  ;;  %v34_v27 = vld [vmem:[%s472_s2 + $0x78] sm:$0xff]  ;;  %v18_v29 = vld [vmem:[%s470_s0] sm:$0xff]  ;;  %s352_s0 = smov [#allocation2]  }
   0xb   :  { %v311_v28 = vpack.c.bf16 %v34_v27, %v33_v26  ;;  %v229_v30 = vld [vmem:[%s473_s3] ss:$0 sm:$0xff]  ;;  %s204_s2 = sshll.u32 %s352_s0, 4  ;;  %s205_s2 = int_to_ptr.vmem [resolvable:$true] %s204_s2 }
   0xc   :  { %289 = vmatpush3.bf16.xpose.msk.msra.mxu0 %vm386_vm1, %v287_v10  ;;  %s324_s3 = scalar_lea.vmem %s205_s2, 16  ;;  %s328_s26 = scalar_lea.vmem %s205_s2, 32 }
   0xd   :  { %290 = vmatprep.subr.bf16.mxu0 %v348_v2  ;;  %p325_p0 = scmp.ne.s32.totalorder %s205_s2, %s324_s3  ;;  %p329_p1 = scmp.lt.s32.totalorder %s205_s2, %s205_s2 }
   0xe   :  { %p330_p2 = scmp.lt.s32.totalorder %s328_s26, %s324_s3 }
  0x10   :  { %p331_p3 = por %p330_p2, %p329_p1 }
  0x12   :  { %p332_p4 = pnand %p331_p3, %p325_p0 }
  0x14   :  { %293 = vmatpush3.bf16.xpose.msk.msra.mxu0 %vm386_vm1, %v291_v13 }
  0x15   :  { %294 = vmatprep.subr.bf16.mxu0 %v348_v2 }
  0x1c   :  { %297 = vmatpush3.bf16.xpose.msk.msra.mxu0 %vm386_vm1, %v295_v16 }
  0x1d   :  { %298 = vmatprep.subr.bf16.mxu0 %v348_v2 }
  0x24   :  { %301 = vmatpush3.bf16.xpose.msk.msra.mxu0 %vm386_vm1, %v299_v19 }
  0x25   :  { %302 = vmatprep.subr.bf16.mxu0 %v348_v2 }
  0x2c   :  { %305 = vmatpush3.bf16.xpose.msk.msra.mxu0 %vm386_vm1, %v303_v22 }
  0x2d   :  { %306 = vmatprep.subr.bf16.mxu0 %v348_v2 }
  0x34   :  { %309 = vmatpush3.bf16.xpose.msk.msra.mxu0 %vm386_vm1, %v307_v25 }
  0x35   :  { %310 = vmatprep.subr.bf16.mxu0 %v348_v2 }
  0x3c   :  { %313 = vmatpush3.bf16.xpose.msk.msra.mxu0 %vm386_vm1, %v311_v28 }
  0x43   :  { %280 = vmatmul.mubr.msk.f32.vlgmr.msra.gmra.mrb[0].mxu0 %vm35_vm0, %v18_v29 }
  0x85   :  { %v162_v31 = vpop.permute.xlu0 %161 }
  0x86   :  { %v170_v32 = vadd.f32 %v229_v30, %v162_v31 }
 0x116   :  { %v153_v33 = vpop.f32.mrb[0].mxu0 }
 0x117   :  { %v171_v34 = vmul.f32 2.0, %v153_v33  ;;  %v281_v35 = vpop.f32.mrb[1].mxu0 }
 0x119   :  { %v172_v36 = vsub.f32 %v170_v32, %v171_v34 }
 0x11b   :  { %v173_v37 = vmax.f32 %v172_v36, 0.0 }
 0x11d   :  { %v174_v38 = vmul.f32 0.1, %v173_v37  ;;  %vm176_vm4 = vcmp.lt.f32.partialorder %v173_v37, 10.0 }
 0x11f   :  { %v177_v39 = vmul.f32 1.442695, %v174_v38 }
 0x121   :  { %320 = vpow2.f32 %v177_v39 }
 0x12b   :  { %v321_v40 = vpop.eup %320 }
 0x12c   :  { %v179_v41 = vadd.f32 1.0, %v321_v40  ;;  %v182_v42 = vmul.f32 -0.5, %v321_v40  ;;  %v185_v44 = vand.u32 2147483647, %v321_v40 }
 0x12e   :  { %322 = vlog2.f32 %v179_v41  ;;  %v183_v43 = vadd.f32 1.0, %v182_v42  ;;  %vm186_vm3 = vcmp.lt.f32.partialorder %v185_v44, 0.0004427343 }
 0x130   :  { %v184_v47 = vmul.f32 %v321_v40, %v183_v43 }
 0x138   :  { %v323_v45 = vpop.eup %322 }
 0x139   :  { %v181_v46 = vmul.f32 0.6931472, %v323_v45 }
 0x13b   :  { %v187_v48 = vsel %vm186_vm3, %v184_v47, %v181_v46 }
 0x13c   :  { %v188_v49 = vmul.f32 10.0, %v187_v48 }
 0x13e   :  { %v190_v50 = vsel %vm176_vm4, %v188_v49, %v173_v37 }
 0x13f   :  { %v191_v51 = vrot.slane %v190_v50, 4 }
 0x141   :  { %v192_v52 = vadd.f32 %v191_v51, %v190_v50 }
 0x143   :  { %v193_v53 = vrot.slane %v192_v52, 2 }
 0x145   :  { %v194_v54 = vadd.f32 %v193_v53, %v192_v52 }
 0x147   :  { %v195_v55 = vrot.slane %v194_v54, 1 }
 0x149   :  { %v196_v56 = vadd.f32 %v195_v55, %v194_v54 }
 0x14b   :  { %197 = vst [vmem:[#allocation2] sm:$0x1] %v196_v56 }
 0x14c   :  { %335 = shalt.err (!%p332_p4)
}
 0x14d   :  { %s336_s1 = scalar_lea.hbm %s474_s4, 16 }
 0x14e   :  { %p337_p5 = scmp.ne.s32.totalorder %s474_s4, %s336_s1  ;;  %p340_p6 = scmp.lt.u32.totalorder %s336_s1, %s474_s4 }
 0x150   :  { %p342_p7 = pnand %p340_p6, %p337_p5 }
 0x152   :  { %345 = shalt.err (!%p342_p7)
}
 0x153   :  { %207 = dma.vmem_to_hbm [thread:$0]  %s205_s2, 16, %s474_s4, [#allocation3]  }
 0x154   :  { %346 = dma.done.wait [#allocation3], 16  }
 0x155   :  { %347 = vsyncadd [#allocation3], 4294967280 }
 0x156   :  { %211 = vsyncpa [#allocation3], 1 }

</bundles_post_ra>
